<compile_context>
chip_gen: v7x
topology: tpu7x:2x2x1
jax: 0.10.0
libtpu: 0.0.40
codegen_flags: <defaults>
</compile_context>

<pallas_src>
import functools

import jax
import jax.numpy as jnp
from jax.experimental import pallas as pl
from jax.experimental.pallas import tpu as pltpu

PRELU_ALPHA = 0.25                 # nn.PReLU() default init (single shared alpha)
BN_EPS = 0.8                       # nn.BatchNorm2d(C, 0.8) -> eps = 0.8
ELT_ROWS = 4096                    # row tile of the lane-dense elementwise kernel
VMEM_LIMIT = 64 * 1024 * 1024
FULL_K_OPERAND_BYTES = 6 * 1024 * 1024   # single-matmul im2col operand budget


def _round_up(v, m):
    return (v + m - 1) // m * m


# ----------------------------------------------------------------------------
# Pallas kernels
# ----------------------------------------------------------------------------
def _make_conv_kernel(kh, kw, cinp, coutp, H, W, pad, lpad, mode, out_act,
                      in_affine, in_act, with_stats, needs_buf, alpha):
    """Fused conv kernel, one image per grid step.

    input stage : optional folded BN affine (+PReLU) of the producer layer,
                  zero spatial halo built in VMEM (no padded HBM copy).
    compute     : in-VMEM im2col + one K=kh*kw*Cin matmul ("full" mode) or
                  one K=kw*Cin matmul per kernel row ("row" mode), f32 acc.
    epilogue    : bias, optional BN partial stats, PReLU / Tanh, bf16 store.
    """
    HW = H * W
    Krow = kw * cinp

    def kernel(*refs):
        n_in = 5 if in_affine else 3
        x_ref, w_ref, b_ref = refs[:3]
        if in_affine:
            s_ref, t_ref = refs[3], refs[4]
        o_ref = refs[n_in]
        if with_stats:
            sum_ref, sq_ref = refs[n_in + 1], refs[n_in + 2]

        # ---- input stage -----------------------------------------------------
        xin = x_ref[0]                                    # (H, W, Cinp) bf16
        if in_affine:
            v = xin.astype(jnp.float32) * s_ref[...] + t_ref[...]
            if in_act == "prelu":
                v = jnp.where(v >= 0, v, alpha * v)
            elif in_act == "tanh":
                v = jnp.tanh(v)
            xin = v.astype(jnp.bfloat16)

        if needs_buf:
            xp_ref = refs[-1]
            # zero halo lives only in VMEM; image stored at sublane-aligned lpad
            xp_ref[...] = jnp.zeros(xp_ref.shape, xp_ref.dtype)
            xp_ref[pad:pad + H, lpad:lpad + W, :] = xin.astype(xp_ref.dtype)

            def taps(dys):
                ps = []
                for dy in dys:
                    for dx in range(kw):
                        c0 = lpad - pad + dx
                        ps.append(
                            xp_ref[dy:dy + H, c0:c0 + W, :].reshape(HW, cinp))
                return ps[0] if len(ps) == 1 else jnp.concatenate(ps, axis=-1)
        else:                                             # 1x1 conv, pad=0
            a_all = xin.reshape(HW, cinp)

            def taps(dys):
                return a_all

        # ---- MXU matmul(s) ----------------------------------------------------
        if mode == "full":
            acc = jnp.dot(taps(range(kh)), w_ref[...],
                          preferred_element_type=jnp.float32)
        else:                                             # "row"
            acc = None
            for dy in range(kh):
                p = jnp.dot(taps([dy]), w_ref[dy * Krow:(dy + 1) * Krow, :],
                            preferred_element_type=jnp.float32)
                acc = p if acc is None else acc + p

        h = acc + b_ref[...]                              # (HW, Coutp) + (1, Coutp)

        if with_stats:
            # per-image BatchNorm partial statistics (reduced over N in JAX)
            sum_ref[0] = jnp.sum(h, axis=0, keepdims=True)
            sq_ref[0] = jnp.sum(h * h, axis=0, keepdims=True)

        if out_act == "prelu":
            h = jnp.where(h >= 0, h, alpha * h)
        elif out_act == "tanh":
            h = jnp.tanh(h)
        # TODO(synk): repack to a lane-dense (HW*Cout/128, 128) store once the
        # lane-fold value reshape is validated on all target generations.
        o_ref[0] = h.astype(o_ref.dtype)

    return kernel


def _make_affine_kernel(act, alpha, has_res):
    """Lane-dense y = act(x * scale + shift [+ res]) on (rows, 128) blocks."""
    def kernel(*refs):
        if has_res:
            x_ref, s_ref, t_ref, r_ref, o_ref = refs
        else:
            x_ref, s_ref, t_ref, o_ref = refs
        y = x_ref[...].astype(jnp.float32) * s_ref[...] + t_ref[...]
        if has_res:
            y = y + r_ref[...].astype(jnp.float32)
        if act == "prelu":
            y = jnp.where(y >= 0, y, alpha * y)
        elif act == "tanh":
            y = jnp.tanh(y)
        o_ref[...] = y.astype(o_ref.dtype)

    return kernel


# ----------------------------------------------------------------------------
# Wrappers around pallas_call
# ----------------------------------------------------------------------------
def conv2d(x_nhwc, w, b, pad, act="linear", with_stats=False,
           in_scale=None, in_shift=None, in_act="linear",
           out_dtype=jnp.bfloat16, alpha=PRELU_ALPHA):
    """Conv2d (stride 1, 'same' zero padding), PyTorch weight (Cout,Cin,kh,kw).

    Optional fused input transform `prelu(x*in_scale + in_shift)` (folded BN of
    the producer layer).  Returns (N, H*W, Cout); with with_stats=True it also
    returns per-image per-channel sum and sum-of-squares of the pre-activation.
    """
    N, H, W, Cin = x_nhwc.shape
    Cout, Cin_w, kh, kw = w.shape
    assert Cin_w == Cin
    HW = H * W
    Cinp = _round_up(Cin, 8)
    Coutp = Cout if Cout % 8 == 0 else _round_up(Cout, 8)
    Ktot = kh * kw * Cinp
    lpad = _round_up(pad, 8)                       # sublane-aligned halo offset

    x_b = x_nhwc.astype(jnp.bfloat16)
    if Cinp != Cin:
        x_b = jnp.pad(x_b, ((0, 0), (0, 0), (0, 0), (0, Cinp - Cin)))

    w_p = w
    if Cinp != Cin or Coutp != Cout:
        w_p = jnp.pad(w, ((0, Coutp - Cout), (0, Cinp - Cin), (0, 0), (0, 0)))
    # (Cout,Cin,kh,kw) -> (kh*kw*Cin, Cout): rows ordered (dy, dx, ci)
    w_r = jnp.transpose(w_p, (2, 3, 1, 0)).reshape(Ktot, Coutp).astype(jnp.bfloat16)
    b_r = jnp.pad(b, (0, Coutp - Cout)).reshape(1, Coutp).astype(jnp.float32)

    in_affine = in_scale is not None
    args = [x_b, w_r, b_r]
    in_specs = [
        pl.BlockSpec((1, H, W, Cinp), lambda n: (n, 0, 0, 0)),
        pl.BlockSpec((Ktot, Coutp), lambda n: (0, 0)),
        pl.BlockSpec((1, Coutp), lambda n: (0, 0)),
    ]
    if in_affine:
        s_r = jnp.pad(in_scale.astype(jnp.float32), (0, Cinp - Cin)).reshape(1, Cinp)
        t_r = jnp.pad(in_shift.astype(jnp.float32), (0, Cinp - Cin)).reshape(1, Cinp)
        args += [s_r, t_r]
        in_specs += [pl.BlockSpec((1, Cinp), lambda n: (0, 0)),
                     pl.BlockSpec((1, Cinp), lambda n: (0, 0))]

    # single K=kh*kw*Cin matmul when the im2col operand fits; else per-row dots
    mode = "full" if HW * Ktot * 2 <= FULL_K_OPERAND_BYTES else "row"
    needs_buf = not (kh == 1 and kw == 1 and pad == 0)

    out_shapes = [jax.ShapeDtypeStruct((N, HW, Coutp), out_dtype)]
    out_specs = [pl.BlockSpec((1, HW, Coutp), lambda n: (n, 0, 0))]
    if with_stats:
        out_shapes += [jax.ShapeDtypeStruct((N, 1, Coutp), jnp.float32)] * 2
        out_specs += [pl.BlockSpec((1, 1, Coutp), lambda n: (n, 0, 0)),
                      pl.BlockSpec((1, 1, Coutp), lambda n: (n, 0, 0))]

    scratch = []
    if needs_buf:
        scratch = [pltpu.VMEM((H + 2 * pad, W + lpad + pad, Cinp), jnp.bfloat16)]

    kernel = _make_conv_kernel(kh, kw, Cinp, Coutp, H, W, pad, lpad, mode, act,
                               in_affine, in_act, with_stats, needs_buf, alpha)

    res = pl.pallas_call(
        kernel,
        out_shape=tuple(out_shapes),
        grid_spec=pltpu.PrefetchScalarGridSpec(
            num_scalar_prefetch=0,
            grid=(N,),
            in_specs=in_specs,
            out_specs=tuple(out_specs),
            scratch_shapes=scratch,
        ),
        compiler_params=pltpu.CompilerParams(
            dimension_semantics=("parallel",),
            vmem_limit_bytes=VMEM_LIMIT),
    )(*args)

    o = res[0]
    if Coutp != Cout:
        o = o[:, :, :Cout]
    if with_stats:
        s_, q_ = res[1], res[2]
        if Coutp != Cout:
            s_, q_ = s_[:, :, :Cout], q_[:, :, :Cout]
        return o, s_, q_
    return o


def bn_affine(x, scale, shift, res=None, act="linear", alpha=PRELU_ALPHA,
              out_dtype=jnp.bfloat16):
    """Fused per-channel affine (+ residual) (+ act) on a lane-dense view."""
    N, HW, C = x.shape
    total = N * HW * C
    assert 128 % C == 0 and total % 128 == 0, (N, HW, C)
    rep = 128 // C
    R = total // 128

    xf = x.reshape(R, 128)
    s128 = jnp.tile(scale.astype(jnp.float32), rep).reshape(1, 128)
    t128 = jnp.tile(shift.astype(jnp.float32), rep).reshape(1, 128)
    has_res = res is not None
    rf = res.reshape(R, 128) if has_res else None

    if R <= ELT_ROWS:
        RT, Rp = R, R
    else:
        RT = ELT_ROWS
        Rp = _round_up(R, RT)
        if Rp != R:
            xf = jnp.pad(xf, ((0, Rp - R), (0, 0)))
            if has_res:
                rf = jnp.pad(rf, ((0, Rp - R), (0, 0)))

    args = [xf, s128, t128]
    in_specs = [pl.BlockSpec((RT, 128), lambda i: (i, 0)),
                pl.BlockSpec((1, 128), lambda i: (0, 0)),
                pl.BlockSpec((1, 128), lambda i: (0, 0))]
    io_alias = {}
    if has_res:
        args.append(rf)
        in_specs.append(pl.BlockSpec((RT, 128), lambda i: (i, 0)))
        if rf.dtype == jnp.dtype(out_dtype):
            io_alias = {3: 0}              # write result in place of the residual

    out = pl.pallas_call(
        _make_affine_kernel(act, alpha, has_res),
        out_shape=jax.ShapeDtypeStruct((Rp, 128), out_dtype),
        grid_spec=pltpu.PrefetchScalarGridSpec(
            num_scalar_prefetch=0,
            grid=(Rp // RT,),
            in_specs=in_specs,
            out_specs=pl.BlockSpec((RT, 128), lambda i: (i, 0)),
        ),
        input_output_aliases=io_alias,
        compiler_params=pltpu.CompilerParams(
            dimension_semantics=("parallel",),
            vmem_limit_bytes=VMEM_LIMIT),
    )(*args)
    if Rp != R:
        out = out[:R]
    return out.reshape(N, HW, C)


def pixel_shuffle(x_nhwc, r):
    """nn.PixelShuffle(r) with PyTorch channel ordering (c*r*r + ry*r + rx)."""
    N, H, W, C = x_nhwc.shape
    Co = C // (r * r)
    x = x_nhwc.reshape(N, H, W, Co, r, r)
    x = jnp.transpose(x, (0, 1, 4, 2, 5, 3))
    return x.reshape(N, H * r, W * r, Co)


def _im2col(x, k, pad):
    """Wrapper-side im2col (only for the tiny 3-channel network input)."""
    N, H, W, _ = x.shape
    xp = jnp.pad(x, ((0, 0), (pad, pad), (pad, pad), (0, 0)))
    cols = [xp[:, dy:dy + H, dx:dx + W, :] for dy in range(k) for dx in range(k)]
    return jnp.concatenate(cols, axis=-1)               # (N, H, W, k*k*C)


# ----------------------------------------------------------------------------
# Parameters (deterministic synthetic init matching the module's shapes)
# ----------------------------------------------------------------------------
def init_params(key, in_c=3, out_c=3, num_res_blocks=16):
    def conv_init(k, cout, cin, ksz):
        kw_, kb_ = jax.random.split(k)
        fan_in = cin * ksz * ksz
        w = jax.random.normal(kw_, (cout, cin, ksz, ksz),
                              jnp.float32) / jnp.sqrt(fan_in)
        b = jax.random.normal(kb_, (cout,), jnp.float32) * 0.01
        return w, b

    keys = jax.random.split(key, 4 + num_res_blocks)
    params = {}
    params["enter_w"], params["enter_b"] = conv_init(keys[0], 64, in_c, 9)

    res_blocks = []
    for i in range(num_res_blocks):
        k1, k2 = jax.random.split(keys[4 + i])
        w1, b1 = conv_init(k1, 64, 64, 3)
        w2, b2 = conv_init(k2, 64, 64, 3)
        res_blocks.append({
            "w1": w1, "b1": b1, "g1": jnp.ones((64,), jnp.float32),
            "be1": jnp.zeros((64,), jnp.float32),
            "w2": w2, "b2": b2, "g2": jnp.ones((64,), jnp.float32),
            "be2": jnp.zeros((64,), jnp.float32),
        })
    params["res_blocks"] = res_blocks

    params["post_w"], params["post_b"] = conv_init(keys[1], 64, 64, 3)
    params["post_g"] = jnp.ones((64,), jnp.float32)
    params["post_be"] = jnp.zeros((64,), jnp.float32)

    up = []
    for kk in jax.random.split(keys[2], 2):
        w, b = conv_init(kk, 256, 64, 3)
        up.append({"w": w, "b": b})
    params["upsample"] = up

    params["out_w"], params["out_b"] = conv_init(keys[3], out_c, 64, 9)
    return params


# ----------------------------------------------------------------------------
# Generator forward (matches the PyTorch module; training-mode BatchNorm)
# ----------------------------------------------------------------------------
def _bn_scale_shift(ssum, ssq, gamma, beta, count):
    """Fold fused per-image BN partial sums into affine scale/shift."""
    s = jnp.sum(ssum, axis=0).reshape(-1)
    q = jnp.sum(ssq, axis=0).reshape(-1)
    mean = s / count
    var = jnp.maximum(q / count - mean * mean, 0.0)      # clamp vs cancellation
    rstd = jax.lax.rsqrt(var + BN_EPS)
    scale = gamma * rstd
    shift = beta - mean * scale
    return scale, shift


def generator_forward(x_nchw, params):
    x = jnp.transpose(x_nchw, (0, 2, 3, 1)).astype(jnp.float32)   # NCHW -> NHWC
    N, H, W, _ = x.shape
    count = N * H * W

    # enter_layer: 9x9 conv on the tiny 3-channel input -> pre-im2col in JAX
    # (one-off, ~200 KB) and run as a single K=243 MXU matmul + fused PReLU.
    x_cols = _im2col(x, 9, 4)
    w_1x1 = jnp.transpose(params["enter_w"],
                          (0, 2, 3, 1)).reshape(64, -1)[:, :, None, None]
    out1 = conv2d(x_cols, w_1x1, params["enter_b"], pad=0, act="prelu")

    # residual blocks (scanned): conv1(+stats) -> [BN1+PReLU folded into conv2's
    # input stage] -> conv2(+stats) -> BN2 + residual add (lane-dense kernel).
    def res_block(out2, blk):
        x_img = out2.reshape(N, H, W, 64)
        h1, s1, q1 = conv2d(x_img, blk["w1"], blk["b1"], pad=1, with_stats=True)
        sc1, sh1 = _bn_scale_shift(s1, q1, blk["g1"], blk["be1"], count)
        h2, s2, q2 = conv2d(h1.reshape(N, H, W, 64), blk["w2"], blk["b2"], pad=1,
                            with_stats=True, in_scale=sc1, in_shift=sh1,
                            in_act="prelu")
        sc2, sh2 = _bn_scale_shift(s2, q2, blk["g2"], blk["be2"], count)
        out2 = bn_affine(h2, sc2, sh2, res=out2, act="linear")
        return out2, None

    stacked = jax.tree_util.tree_map(lambda *xs: jnp.stack(xs),
                                     *params["res_blocks"])
    out2, _ = jax.lax.scan(res_block, out1, stacked)

    # postres_layer: Conv + BN, then global skip  out4 = out1 + out3
    h, s, q = conv2d(out2.reshape(N, H, W, 64), params["post_w"],
                     params["post_b"], pad=1, with_stats=True)
    sc, sh = _bn_scale_shift(s, q, params["post_g"], params["post_be"], count)
    out4 = bn_affine(h, sc, sh, res=out1, act="linear")

    # 2x upsample blocks: Conv(64->256) + fused PReLU (commutes with the
    # PixelShuffle permutation), PixelShuffle(2) as plain-JAX layout.
    h_img = out4.reshape(N, H, W, 64)
    for up in params["upsample"]:
        n_, ch_, cw_, _ = h_img.shape
        hc = conv2d(h_img, up["w"], up["b"], pad=1, act="prelu")
        h_img = pixel_shuffle(hc.reshape(n_, ch_, cw_, 256), 2)

    # output: Conv(64->3, k9, p4, Cout padded to 8 inside) + fused Tanh, f32
    n_, fh, fw, _ = h_img.shape
    out = conv2d(h_img, params["out_w"], params["out_b"], pad=4, act="tanh",
                 out_dtype=jnp.float32)
    out = out.reshape(n_, fh, fw, -1)
    return jnp.transpose(out, (0, 3, 1, 2))                       # NHWC -> NCHW


# ----------------------------------------------------------------------------
def _ref_conv(x_nhwc, w, b, pad):
    """f32 reference conv on the same bf16-rounded operands (for spot checks)."""
    xb = x_nhwc.astype(jnp.bfloat16).astype(jnp.float32)
    wb = jnp.transpose(w, (2, 3, 1, 0)).astype(jnp.bfloat16).astype(jnp.float32)
    y = jax.lax.conv_general_dilated(
        xb, wb, window_strides=(1, 1), padding=((pad, pad), (pad, pad)),
        dimension_numbers=("NHWC", "HWIO", "NHWC"),
        precision=jax.lax.Precision.HIGHEST)
    return y + b


if __name__ == "__main__":
    key = jax.random.PRNGKey(0)
    pkey, xkey = jax.random.split(key)
    params = init_params(pkey, in_c=3, out_c=3, num_res_blocks=16)

    # small deterministic input, NCHW like PyTorch
    x = jax.random.normal(xkey, (2, 3, 16, 16), jnp.float32)
    xs = jnp.transpose(x, (0, 2, 3, 1))

    # --- spot check 1: enter layer (wrapper im2col + single K=243 matmul) ---
    w_1x1 = jnp.transpose(params["enter_w"],
                          (0, 2, 3, 1)).reshape(64, -1)[:, :, None, None]
    h = jax.jit(lambda a: conv2d(_im2col(a, 9, 4), w_1x1, params["enter_b"],
                                 pad=0, act="prelu"))(xs)
    ref = _ref_conv(xs, params["enter_w"], params["enter_b"], 4)
    ref = jnp.where(ref >= 0, ref, PRELU_ALPHA * ref)
    err = float(jnp.max(jnp.abs(h.astype(jnp.float32).reshape(ref.shape) - ref)))
    assert err < 1e-1, err

    # --- spot check 2: 3x3 wide-K conv with in-VMEM halo + fused BN stats ---
    x64 = jax.random.normal(jax.random.PRNGKey(1), (2, 16, 16, 64), jnp.float32)
    blk0 = params["res_blocks"][0]
    h, s, q = jax.jit(lambda a: conv2d(a, blk0["w1"], blk0["b1"], pad=1,
                                       with_stats=True))(x64)
    ref = _ref_conv(x64, blk0["w1"], blk0["b1"], 1)
    err = float(jnp.max(jnp.abs(h.astype(jnp.float32).reshape(ref.shape) - ref)))
    assert err < 1e-1, err
    m_ker = jnp.sum(s, axis=0).reshape(-1) / (2 * 16 * 16)
    m_ref = jnp.mean(ref, axis=(0, 1, 2))
    assert float(jnp.max(jnp.abs(m_ker - m_ref))) < 1e-2

    # --- spot check 3: BN+PReLU folded into the consumer conv's input stage ---
    sc = jnp.linspace(0.5, 1.5, 64, dtype=jnp.float32)
    sh = jnp.linspace(-0.2, 0.2, 64, dtype=jnp.float32)
    h64 = x64.astype(jnp.bfloat16)
    got = jax.jit(lambda a: conv2d(a, blk0["w2"], blk0["b2"], pad=1,
                                   in_scale=sc, in_shift=sh,
                                   in_act="prelu"))(h64)
    xin = h64.astype(jnp.float32) * sc + sh
    xin = jnp.where(xin >= 0, xin, PRELU_ALPHA * xin)
    ref = _ref_conv(xin, blk0["w2"], blk0["b2"], 1)
    err = float(jnp.max(jnp.abs(got.astype(jnp.float32).reshape(ref.shape) - ref)))
    assert err < 1e-1, err

    # --- full forward ---
    fwd = jax.jit(functools.partial(generator_forward, params=params))
    y = fwd(x)
    jax.block_until_ready(y)

    assert y.shape == (2, 3, 64, 64), y.shape        # 4x super-resolution
    assert bool(jnp.all(jnp.isfinite(y)))
    assert bool(jnp.all(jnp.abs(y) <= 1.0 + 1e-6))   # tanh output range
    print("KERNEL_OK")
</pallas_src>

<mosaic_0001>
module attributes {stable_mosaic.version = 11 : i64} {
  func.func @kernel(%arg0: i32, %arg1: memref<1x16x16x248xbf16, #tpu.memory_space<vmem>>, %arg2: memref<248x64xbf16, #tpu.memory_space<vmem>>, %arg3: memref<1x64xf32, #tpu.memory_space<vmem>>, %arg4: memref<1x256x64xbf16, #tpu.memory_space<vmem>>) attributes {dimension_semantics = [#tpu.dimension_semantics<parallel>], iteration_bounds = array<i64: 2>, scalar_prefetch = 0 : i64, scratch_operands = 0 : i64, tpu.core_type = #tpu.core_type<tc>, window_params = [{transform_indices = @transform_0, window_bounds = array<i64: 1, 16, 16, 248>}, {pipeline_mode = #tpu.pipeline_mode<synchronous>, transform_indices = @transform_1, window_bounds = array<i64: 248, 64>}, {pipeline_mode = #tpu.pipeline_mode<synchronous>, transform_indices = @transform_2, window_bounds = array<i64: 1, 64>}, {transform_indices = @transform_3, window_bounds = array<i64: 1, 256, 64>}]} {
    %c0 = arith.constant 0 : index
    %c0_0 = arith.constant 0 : index
    %c0_1 = arith.constant 0 : index
    %c0_2 = arith.constant 0 : index
    %0 = vector.load %arg1[%c0, %c0_0, %c0_1, %c0_2] : memref<1x16x16x248xbf16, #tpu.memory_space<vmem>>, vector<1x16x16x248xbf16>
    %1 = vector.shape_cast %0 : vector<1x16x16x248xbf16> to vector<16x16x248xbf16>
    %2 = vector.shape_cast %1 : vector<16x16x248xbf16> to vector<256x248xbf16>
    %c0_3 = arith.constant 0 : index
    %c0_4 = arith.constant 0 : index
    %3 = vector.load %arg2[%c0_3, %c0_4] : memref<248x64xbf16, #tpu.memory_space<vmem>>, vector<248x64xbf16>
    %cst = arith.constant dense<0.000000e+00> : vector<256x64xf32>
    %4 = tpu.matmul %2, %3, %cst {dimension_numbers = #tpu.dot_dimension_numbers<[1], [0], [0], [1], [0, 0, 1, 1], [], []>} : vector<256x248xbf16>, vector<248x64xbf16>, vector<256x64xf32> -> vector<256x64xf32>
    %c0_5 = arith.constant 0 : index
    %c0_6 = arith.constant 0 : index
    %5 = vector.load %arg3[%c0_5, %c0_6] : memref<1x64xf32, #tpu.memory_space<vmem>>, vector<1x64xf32>
    %6 = vector.broadcast %5 : vector<1x64xf32> to vector<256x64xf32>
    %7 = arith.addf %4, %6 : vector<256x64xf32>
    %cst_7 = arith.constant 0.000000e+00 : f32
    %8 = vector.broadcast %cst_7 : f32 to vector<256x64xf32>
    %9 = arith.cmpf oge, %7, %8 : vector<256x64xf32>
    %cst_8 = arith.constant 2.500000e-01 : f32
    %10 = vector.broadcast %cst_8 : f32 to vector<256x64xf32>
    %11 = arith.mulf %10, %7 : vector<256x64xf32>
    %12 = arith.select %9, %7, %11 : vector<256x64xi1>, vector<256x64xf32>
    %13 = arith.truncf %12 : vector<256x64xf32> to vector<256x64xbf16>
    %c0_9 = arith.constant 0 : index
    %c0_10 = arith.constant 0 : index
    %c0_11 = arith.constant 0 : index
    %14 = vector.load %arg4[%c0_9, %c0_10, %c0_11] : memref<1x256x64xbf16, #tpu.memory_space<vmem>>, vector<1x256x64xbf16>
    %15 = vector.shape_cast %14 : vector<1x256x64xbf16> to vector<256x64xbf16>
    %16 = vector.shape_cast %13 : vector<256x64xbf16> to vector<1x256x64xbf16>
    tpu.vector_store %arg4[%c0_9, %c0_10, %c0_11], %16 {strides = array<i32>} : memref<1x256x64xbf16, #tpu.memory_space<vmem>>, vector<1x256x64xbf16>,
    return
  }
  func.func @transform_0(%arg0: i32) -> (i32, i32, i32, i32) {
    %c0_i32 = arith.constant 0 : i32
    %c0_i32_0 = arith.constant 0 : i32
    %c0_i32_1 = arith.constant 0 : i32
    %c0_i32_2 = arith.constant 0 : i32
    return %arg0, %c0_i32, %c0_i32_0, %c0_i32_1 : i32, i32, i32, i32
  }
  func.func @transform_1(%arg0: i32) -> (i32, i32) {
    %c0_i32 = arith.constant 0 : i32
    %c0_i32_0 = arith.constant 0 : i32
    %c0_i32_1 = arith.constant 0 : i32
    return %c0_i32, %c0_i32_0 : i32, i32
  }
  func.func @transform_2(%arg0: i32) -> (i32, i32) {
    %c0_i32 = arith.constant 0 : i32
    %c0_i32_0 = arith.constant 0 : i32
    %c0_i32_1 = arith.constant 0 : i32
    return %c0_i32, %c0_i32_0 : i32, i32
  }
  func.func @transform_3(%arg0: i32) -> (i32, i32, i32) {
    %c0_i32 = arith.constant 0 : i32
    %c0_i32_0 = arith.constant 0 : i32
    %c0_i32_1 = arith.constant 0 : i32
    return %arg0, %c0_i32, %c0_i32_0 : i32, i32, i32
  }
}

</mosaic_0001>

<bundles_post_ra>
// kernel: _lambda_.1
= control target key start
LH: loop header
LB: loop body
LE: loop exit
PB: predicated region body
PF: predicated region fallthrough
CT: control target
= control target key end

     0   :  { %8 = vsyncpa [#allocation3], 0  ;;  %s2092_s0 = inlined_call_operand.hbm [shape: bf16[2,16,16,248], index: 0, kind: input, shape index: {}]   ;;  %s2093_s1 = inlined_call_operand.hbm [shape: bf16[248,64], index: 1, kind: input, shape index: {}]   ;;  %s2094_s2 = inlined_call_operand.hbm [shape: f32[1,64], index: 2, kind: input, shape index: {}]   ;;  %s2095_s3 = inlined_call_operand.hbm [shape: bf16[2,256,64], index: 3, kind: output, shape index: {}]  }
   0x1   :  { %10 = vsyncpa [#allocation3 + $0x1], 0 }
   0x2   :  { %11 = vsyncpa [#allocation6], 0 }
   0x3   :  { %12 = vsyncpa [#allocation4], 0 }
   0x4   :  { %14 = vsyncpa [#allocation4 + $0x1], 0  ;;  %s1705_s12 = smov 0   ;;  %s1707_s13 = smov 0  }
   0x5   :  { %s1709_s14 = smov 0   ;;  %s1711_s15 = smov 0  }
   0x6 LB: > { %s1726_s16 = sadd.s32 4294967295, %s1673_s15   ;;  %s1101_s17 = sadd.s32 4294967294, %s1673_s15   ;;  %s1673_s15 = sphi %s1711_s15, %s2115_s15   ;;  %s1669_s14 = sphi %s1709_s14, %s2114_s14   ;;  %s1665_s13 = sphi %s1707_s13, %s2113_s13   ;;  %s1661_s12 = sphi %s1705_s12, %s2112_s12  }
   0x7   : > { %p40_p0 = scmp.ne.s32.totalorder %s1665_s13, %s1661_s12  ;;  %p2096_p1 = scmp.eq.s32.totalorder %s1726_s16, 0 }
   0x8   : > { %p112_p3 = scmp.eq.s32.totalorder %s1101_s17, 1  ;;  %p1102_p5 = scmp.ge.s32.totalorder %s1673_s15, 1 }
   0x9   : > { %p1735_p4 = por %p2096_p1, %p40_p0  ;;  %p119_p7 = scmp.lt.s32.totalorder %s1673_s15, 3 }
   0xa   : > { %p1740_p6 = por %p112_p3, %p40_p0  ;;  %s1675_s21 = smov [#allocation5]  }
   0xb   : > { %s2099_s18 = scalar_select %p1735_p4, 1, 0 }
   0xc   : > { %s2100_s19 = scalar_select %p1740_p6, 1, 0 }
   0xd   : > { %p1745_p8 = pnand %p1102_p5, %p119_p7  ;;  %s131_s22 = sshll.u32 %s1675_s21, 4  ;;  %s1749_s22 = int_to_ptr.vmem [resolvable:$true] %s131_s22 }
   0xe   : > { %s1676_s24 = smov [#allocation7]   ;;  %s1517_s28 = scalar_lea.hbm %s2093_s1, 1984 }
   0xf   : > { %p1392_p9 = pneg %p1745_p8  ;;  %s145_s25 = sshll.u32 %s1676_s24, 4  ;;  %s1760_s25 = int_to_ptr.vmem [resolvable:$true] %s145_s25 }
  0x10   : > { %p1518_p12 = scmp.ne.s32.totalorder %s2093_s1, %s1517_s28  ;;  %p1524_p5 = scmp.lt.u32.totalorder %s1517_s28, %s2093_s1 }
  0x11   : > { %p1756_p11 = pnand %p1392_p9, %p2096_p1 }
  0x13   : > { %p1519_p13 = pneg %p1756_p11 }
  0x15   : > { %p1520_p0 = pnand %p1519_p13, %p1518_p12 }
  0x17   : > { %p1521_p3 = pneg %p1520_p0 }
  0x19   : > { %p1526_p7 = pnand %p1524_p5, %p1521_p3 }
  0x1b   : > { %1529 = shalt.err (!%p1526_p7)
}
  0x1c   : > { %s1530_s6 = scalar_lea.vmem %s1749_s22, 1984  ;;  %p1538_p2 = scmp.lt.s32.totalorder %s1749_s22, %s1749_s22 }
  0x1d   : > { %p1531_p9 = scmp.ne.s32.totalorder %s1749_s22, %s1530_s6  ;;  %p1539_p12 = scmp.lt.s32.totalorder %s1530_s6, %s1530_s6 }
  0x1f   : > { %p1533_p10 = pnand %p1531_p9, %p1519_p13  ;;  %p1540_p0 = por %p1539_p12, %p1538_p2 }
  0x21   : > { %p1534_p1 = pneg %p1533_p10 }
  0x23   : > { %p1541_p6 = pnand %p1540_p0, %p1534_p1 }
  0x25   : > { %1544 = shalt.err (!%p1541_p6)
}
  0x26   : > { %s1677_s7 = smov 64   ;;  %s1678_s8 = smov 4  }
  0x27   : > { %1395 = dma.hbm_to_vmem [thread:$0]  (!%p1756_p11), %s2093_s1, 1984, %s1749_s22, [#allocation6], %s1677_s7, %s1677_s7, %s1678_s8  }
  0x28   : > { %s1545_s21 = scalar_lea.hbm %s2094_s2, 16 }
  0x29   : > { %p1546_p2 = scmp.ne.s32.totalorder %s2094_s2, %s1545_s21  ;;  %p1552_p10 = scmp.lt.u32.totalorder %s1545_s21, %s2094_s2 }
  0x2b   : > { %p1548_p1 = pnand %p1546_p2, %p1519_p13 }
  0x2d   : > { %p1549_p6 = pneg %p1548_p1 }
  0x2f   : > { %p1554_p3 = pnand %p1552_p10, %p1549_p6 }
  0x31   : > { %1557 = shalt.err (!%p1554_p3)
}
  0x32   : > { %s1558_s22 = scalar_lea.vmem %s1760_s25, 16  ;;  %s1565_s29 = scalar_lea.vmem %s1760_s25, 32 }
  0x33   : > { %p1559_p5 = scmp.ne.s32.totalorder %s1760_s25, %s1558_s22  ;;  %p1566_p12 = scmp.lt.s32.totalorder %s1760_s25, %s1760_s25 }
  0x34   : > { %p1567_p0 = scmp.lt.s32.totalorder %s1565_s29, %s1558_s22 }
  0x35   : > { %p1561_p7 = pnand %p1559_p5, %p1519_p13 }
  0x36   : > { %p1568_p2 = por %p1567_p0, %p1566_p12 }
  0x37   : > { %p1562_p9 = pneg %p1561_p7 }
  0x39   : > { %p1569_p1 = pnand %p1568_p2, %p1562_p9 }
  0x3b   : > { %1572 = shalt.err (!%p1569_p1)
}
  0x3c   : > { %1398 = dma.hbm_to_vmem [thread:$0]  (!%p1756_p11), %s2094_s2, 16, %s1760_s25, [#allocation6]  }
  0x3d   : > { %s1816_s5 = sadd.s32 1, %s1673_s15   ;;  %s27_s23 = sadd.s32 1, %s1669_s14 }
  0x3e   : > { %s24_s6 = ssub.s32 %s1673_s15, %s1816_s5  ;;  %p34_p13 = scmp.ne.s32.totalorder %s1669_s14, %s1665_s13 }
  0x3f   : > { %p25_p6 = scmp.eq.s32.totalorder %s24_s6, 0  ;;  %p35_p10 = scmp.eq.s32.totalorder %s1673_s15, 0 }
  0x40   : > { %p2103_p3 = scmp.eq.s32.totalorder %s1726_s16, 1  ;;  %p1409_p7 = scmp.lt.s32.totalorder %s1673_s15, 2 }
  0x41   : > { %s1832_s8 = scalar_select %p25_p6, %s1669_s14, %s27_s23  }
  0x42   : > { %p1826_p5 = por %p2103_p3, %p34_p13  ;;  %p36_p9 = por %p35_p10, %p34_p13 }
  0x43   : > { %s156_s9 = sand.u32 1, %s1669_s14   ;;  %s1216_s25 = sshll.u32 %s1673_s15, 12 }
  0x44   : > { %s2104_s7 = scalar_select %p1826_p5, 1, 0 }
  0x45   : > { %s1106_s10 = sshll.u32 %s156_s9, 8  ;;  %s1839_s21 = scalar_lea.hbm %s2092_s0, %s1216_s25 }
  0x46   : > { %s160_s24 = scalar_lea.vmem [#allocation2], %s1106_s10  ;;  %p1843_p11 = pnand %p1409_p7, %p36_p9 }
  0x47   : > { %s167_s26 = sshll.u32 %s160_s24, 4  ;;  %s1847_s28 = scalar_lea.sflag [#allocation3], %s156_s9  ;;  %s1841_s26 = int_to_ptr.vmem [resolvable:$true] %s167_s26 }
  0x48   : > { %s1573_s22 = scalar_lea.hbm %s1839_s21, 4096  ;;  %p1575_p0 = pneg %p1843_p11 }
  0x49   : > { %p1574_p12 = scmp.ne.s32.totalorder %s1839_s21, %s1573_s22  ;;  %s1578_s4 = scalar_lea.hbm %s2092_s0, 8192 }
  0x4a   : > { %p1579_p13 = scmp.lt.u32.totalorder %s1839_s21, %s2092_s0  ;;  %p1580_p6 = scmp.lt.u32.totalorder %s1578_s4, %s1573_s22 }
  0x4b   : > { %p1576_p2 = pnand %p1575_p0, %p1574_p12  ;;  %p1582_p3 = scmp.lt.u32.totalorder %s1573_s22, %s1839_s21 }
  0x4c   : > { %p1581_p10 = por %p1580_p6, %p1579_p13 }
  0x4d   : > { %p1577_p1 = pneg %p1576_p2 }
  0x4e   : > { %p1583_p7 = por %p1582_p3, %p1581_p10 }
  0x50   : > { %p1584_p9 = pnand %p1583_p7, %p1577_p1 }
  0x52   : > { %1587 = shalt.err (!%p1584_p9)
}
  0x53   : > { %s1588_s9 = scalar_lea.vmem %s1841_s26, 4096  ;;  %s1679_s10 = smov [#allocation2]  }
  0x54   : > { %p1589_p12 = scmp.ne.s32.totalorder %s1841_s26, %s1588_s9  ;;  %s1593_s25 = sshll.u32 %s1679_s10, 4  ;;  %s1594_s25 = int_to_ptr.vmem [resolvable:$false] %s1593_s25 }
  0x55   : > { %s1595_s11 = scalar_lea.vmem %s1594_s25, 8192  ;;  %p1596_p4 = scmp.lt.s32.totalorder %s1841_s26, %s1594_s25 }
  0x56   : > { %p1591_p2 = pnand %p1589_p12, %p1575_p0  ;;  %p1597_p13 = scmp.lt.s32.totalorder %s1595_s11, %s1588_s9 }
  0x58   : > { %p1592_p5 = pneg %p1591_p2  ;;  %p1598_p6 = por %p1597_p13, %p1596_p4 }
  0x5a   : > { %p1599_p10 = pnand %p1598_p6, %p1592_p5 }
  0x5c   : > { %1602 = shalt.err (!%p1599_p10)
}
  0x5d   : > { %s1680_s17 = smov 128   ;;  %s1681_s24 = smov 8  }
  0x5e   : > { %1402 = dma.hbm_to_vmem [thread:$0]  (!%p1843_p11), %s1839_s21, 4096, %s1841_s26, %s1847_s28, %s1680_s17, %s1680_s17, %s1681_s24  }
  0x5f   : > { %179 = sbr.rel (%p1745_p8) target bundleno = 436 (0x1b4), region = 32  ;;  %s1878_s22 = sand.u32 (!%p1745_p8), 1, %s1665_s13  }
  0x60   : > { %s1110_s29 = sshll.u32 (!%p1745_p8), %s1878_s22, 8  ;;  %s182_s30 = scalar_lea.sflag (!%p1745_p8), [#allocation3], %s1878_s22 }
  0x61   : > { %s1882_s4 = scalar_lea.vmem (!%p1745_p8), [#allocation2], %s1110_s29  ;;  %p2106_p4 = scmp.ne.s32.totalorder (!%p1745_p8), %s2099_s18, 0 }
  0x66   : > { %1648 = dma.done.wait (%p2106_p4), %s182_s30, 4096  }
  0x67   : > { %1650 = vsyncadd (%p2106_p4), %s182_s30, 4294963200  ;;  %p2107_p5 = scmp.eq.s32.totalorder %s1726_s16, 0 }
  0x69   : > { %1652 = dma.done.wait (%p2107_p5), [#allocation6], 2000   ;;  %p2108_p8 = pmov %p2107_p5 }
  0x6a   : > { %v1453_v0 = vld [vmem:[#allocation5 + $0x40] sm:$0xff]   ;;  %v1455_v2 = vld [vmem:[#allocation5 + $0x48] sm:$0xff]   ;;  %v1457_v4 = vld [vmem:[#allocation5 + $0x50] sm:$0xff]   ;;  %vm524_vm0 = vcmask 982016   ;;  %vm573_vm1 = vcmask 1043456   ;;  %s1113_s18 = sshll.u32 %s1878_s22, 7 }
  0x6b   : > { %1654 = vsyncadd (%p2108_p8), [#allocation6], 4294965296  ;;  %v1454_v1 = vld [vmem:[#allocation5] sm:$0xff]   ;;  %1250 = vmatprep.subr.bf16.mxu0 %v1453_v0  ;;  %1362 = vmatprep.subr.bf16.mxu1 %v1453_v0  ;;  %v1456_v3 = vld [vmem:[#allocation5 + $0x8] sm:$0xff]   ;;  %vm962_vm4 = vcmask 519168   ;;  %s1947_s20 = scalar_lea.vmem [#allocation8], %s1113_s18 }
  0x6c   : > { %1251 = vmatpush3.bf16.msra.mxu0 %v1454_v1  ;;  %1370 = vmatpush3.bf16.msra.mxu1 %v1454_v1  ;;  %v1458_v5 = vld [vmem:[#allocation5 + $0x10] sm:$0xff]   ;;  %v1459_v6 = vld [vmem:[#allocation5 + $0x58] sm:$0xff]   ;;  %v1461_v8 = vld [vmem:[#allocation5 + $0x60] sm:$0xff]   ;;  %s1249_s21 = sshll.u32 %s1726_s16, 11  ;;  %s1009_s26 = sshll.u32 %s1947_s20, 4  ;;  %s2044_s26 = int_to_ptr.vmem [resolvable:$true] %s1009_s26 }
  0x6d   : > { %1252 = vmatprep.subr.bf16.mxu0 %v1455_v2  ;;  %1363 = vmatprep.subr.bf16.mxu1 %v1455_v2  ;;  %v1460_v7 = vld [vmem:[#allocation5 + $0x18] sm:$0xff]   ;;  %v1462_v9 = vld [vmem:[#allocation5 + $0x20] sm:$0xff]   ;;  %v1463_v10 = vld [vmem:[#allocation5 + $0x68] sm:$0xff]   ;;  %s2042_s23 = scalar_lea.hbm %s2095_s3, %s1249_s21  ;;  %s996_s16 = scalar_lea.sflag [#allocation4], %s1878_s22 }
  0x6e   : > { %v1471_v11 = vld [vmem:[%s1882_s4 + $0x4] ss:$8 sps:$4 sm:$0xff]   ;;  %v1465_v14 = vld [vmem:[#allocation5 + $0x70] sm:$0xff]   ;;  %v1467_v16 = vld [vmem:[#allocation5 + $0x78] ss:$0 sps:$4 sm:$0xff]   ;;  %s1603_s6 = scalar_lea.vmem %s2044_s26, 2048 }
  0x6f   : > { %1163 = vmatprep.mubr.msk.bf16.mxu0 %vm524_vm0, %v1471_v11  ;;  %v1474_v12 = vld [vmem:[%s1882_s4 + $0x84] ss:$8 sps:$4 sm:$0xff]   ;;  %v1466_v15 = vld [vmem:[#allocation5 + $0x30] sm:$0xff]   ;;  %v1468_v17 = vld [vmem:[#allocation5 + $0x38] sm:$0xff]   ;;  %p1604_p11 = scmp.ne.s32.totalorder %s2044_s26, %s1603_s6  ;;  %p2109_p0 = scmp.ne.s32.totalorder %s2104_s7, 0 }
  0x70   : > { %1253 = vmatpush3.bf16.msra.mxu0 %v1456_v3  ;;  %1371 = vmatpush3.bf16.msra.mxu1 %v1456_v3  ;;  %v1464_v13 = vld [vmem:[#allocation5 + $0x28] sm:$0xff]   ;;  %v1475_v20 = vld [vmem:[%s1882_s4 + $0x14] ss:$8 sps:$4 sm:$0xff]   ;;  %v1479_v22 = vld [vmem:[%s1882_s4 + $0x10] ss:$8 sps:$4 sm:$0xff]   ;;  %s1682_s9 = smov [#allocation8]  }
  0x71   : > { %1254 = vmatprep.subr.bf16.mxu0 %v1457_v4  ;;  %1364 = vmatprep.subr.bf16.mxu1 %v1457_v4  ;;  %v1469_v18 = vld [vmem:[%s1882_s4] ss:$8 sps:$4 sm:$0xff]   ;;  %v1477_v21 = vld [vmem:[%s1882_s4 + $0x94] ss:$8 sps:$4 sm:$0xff]   ;;  %v1480_v23 = vld [vmem:[%s1882_s4 + $0x90] ss:$8 sps:$4 sm:$0xff]   ;;  %p1605_p1 = pnand %p1604_p11, %p2109_p0 }
  0x72   : > { %1171 = vmatprep.mubr.msk.bf16.mxu1 %vm524_vm0, %v1474_v12  ;;  %v1472_v19 = vld [vmem:[%s1882_s4 + $0x80] ss:$8 sps:$4 sm:$0xff]   ;;  %v1481_v24 = vld [vmem:[%s1882_s4 + $0x24] ss:$8 sps:$4 sm:$0xff]   ;;  %v1487_v28 = vld [vmem:[%s1882_s4 + $0x34] ss:$8 sps:$4 sm:$0xff]  }
  0x73   : > { %v1483_v25 = vld [vmem:[%s1882_s4 + $0xa4] ss:$8 sps:$4 sm:$0xff]   ;;  %v1485_v26 = vld [vmem:[%s1882_s4 + $0x20] ss:$8 sps:$4 sm:$0xff]   ;;  %v1489_v29 = vld [vmem:[%s1882_s4 + $0xb4] ss:$8 sps:$4 sm:$0xff]   ;;  %p1606_p3 = pneg %p1605_p1 }
  0x74   : > { %1255 = vmatpush3.bf16.msra.mxu0 %v1458_v5  ;;  %1372 = vmatpush3.bf16.msra.mxu1 %v1458_v5  ;;  %v1486_v27 = vld [vmem:[%s1882_s4 + $0xa0] ss:$8 sps:$4 sm:$0xff]   ;;  %v1491_v30 = vld [vmem:[%s1882_s4 + $0x30] ss:$8 sps:$4 sm:$0xff]   ;;  %v1493_v32 = vld [vmem:[%s1882_s4 + $0x44] ss:$8 sps:$4 sm:$0xff]  }
  0x75   : > { %1256 = vmatprep.subr.bf16.mxu0 %v1459_v6  ;;  %1365 = vmatprep.subr.bf16.mxu1 %v1459_v6  ;;  %v1492_v31 = vld [vmem:[%s1882_s4 + $0xb0] ss:$8 sps:$4 sm:$0xff]   ;;  %v1495_v33 = vld [vmem:[%s1882_s4 + $0xc4] ss:$8 sps:$4 sm:$0xff]   ;;  %v1497_v34 = vld [vmem:[%s1882_s4 + $0x40] ss:$8 sps:$4 sm:$0xff]  }
  0x76   : > { %v1498_v35 = vld [vmem:[%s1882_s4 + $0xc0] ss:$8 sps:$4 sm:$0xff]   ;;  %v1499_v36 = vld [vmem:[%s1882_s4 + $0x54] ss:$8 sps:$4 sm:$0xff]   ;;  %v1503_v38 = vld [vmem:[%s1882_s4 + $0x50] ss:$8 sps:$4 sm:$0xff]  }
  0x77   : > { %v1501_v37 = vld [vmem:[%s1882_s4 + $0xd4] ss:$8 sps:$4 sm:$0xff]   ;;  %v1504_v39 = vld [vmem:[%s1882_s4 + $0xd0] ss:$8 sps:$4 sm:$0xff]   ;;  %v1505_v40 = vld [vmem:[%s1882_s4 + $0x64] ss:$8 sps:$4 sm:$0xff]  }
  0x78   : > { %1257 = vmatpush3.bf16.msra.mxu0 %v1460_v7  ;;  %1373 = vmatpush3.bf16.msra.mxu1 %v1460_v7  ;;  %v1507_v41 = vld [vmem:[%s1882_s4 + $0xe4] ss:$8 sps:$4 sm:$0xff]   ;;  %v1509_v42 = vld [vmem:[%s1882_s4 + $0x60] ss:$8 sps:$4 sm:$0xff]   ;;  %v1511_v44 = vld [vmem:[%s1882_s4 + $0x74] ss:$8 sps:$4 sm:$0xff]  }
  0x79   : > { %1258 = vmatprep.subr.bf16.mxu0 %v1461_v8  ;;  %1366 = vmatprep.subr.bf16.mxu1 %v1461_v8  ;;  %v1510_v43 = vld [vmem:[%s1882_s4 + $0xe0] ss:$8 sps:$4 sm:$0xff]   ;;  %v1513_v45 = vld [vmem:[%s1882_s4 + $0xf4] ss:$8 sps:$4 sm:$0xff]   ;;  %v1515_v46 = vld [vmem:[%s1882_s4 + $0x70] ss:$8 sps:$4 sm:$0xff]  }
  0x7a   : > { %v1516_v47 = vld [vmem:[%s1882_s4 + $0xf0] ss:$8 sps:$4 sm:$0xff]   ;;  %v1940_v50 = vld [vmem:[#allocation7] ss:$0 sm:$0xff]  ;;  %s1607_s10 = sshll.u32 %s1682_s9, 4  ;;  %s1608_s10 = int_to_ptr.vmem [resolvable:$false] %s1607_s10 }
  0x7b   : > { %s1609_s25 = scalar_lea.vmem %s1608_s10, 4096  ;;  %p1610_p7 = scmp.lt.s32.totalorder %s2044_s26, %s1608_s10 }
  0x7c   : > { %1259 = vmatpush3.bf16.msra.mxu0 %v1462_v9  ;;  %1374 = vmatpush3.bf16.msra.mxu1 %v1462_v9  ;;  %p1611_p9 = scmp.lt.s32.totalorder %s1609_s25, %s1603_s6 }
  0x7d   : > { %1260 = vmatprep.subr.bf16.mxu0 %v1463_v10  ;;  %1367 = vmatprep.subr.bf16.mxu1 %v1463_v10 }
  0x7e   : > { %p1612_p12 = por %p1611_p9, %p1610_p7 }
  0x80   : > { %1261 = vmatpush3.bf16.msra.mxu0 %v1464_v13  ;;  %1375 = vmatpush3.bf16.msra.mxu1 %v1464_v13  ;;  %p1613_p2 = pnand %p1612_p12, %p1606_p3 }
  0x81   : > { %1262 = vmatprep.subr.bf16.mxu0 %v1465_v14  ;;  %1368 = vmatprep.subr.bf16.mxu1 %v1465_v14 }
  0x84   : > { %1263 = vmatpush3.bf16.msra.mxu0 %v1466_v15  ;;  %1376 = vmatpush3.bf16.msra.mxu1 %v1466_v15 }
  0x85   : > { %1378 = vmatprep.subr.msk.bf16.mxu0 %vm573_vm1, %v1467_v16  ;;  %1379 = vmatprep.subr.msk.bf16.mxu1 %vm573_vm1, %v1467_v16 }
  0x88   : > { %1265 = vmatpush3.bf16.msra.mxu0 %v1468_v17  ;;  %1377 = vmatpush3.bf16.msra.mxu1 %v1468_v17 }
  0x8b   : > { %610 = vmatmul.mubr.bf16.vlgmr.msra.gmra.mrb[0].mxu0 %v1469_v18  ;;  %674 = vmatmul.mubr.bf16.vlgmr.msra.gmra.mrb[0].mxu1 %v1472_v19 }
  0x8c   : > { %1164 = vmatprep.mubr.msk.bf16.mxu0 %vm524_vm0, %v1475_v20  ;;  %1172 = vmatprep.mubr.msk.bf16.mxu1 %vm524_vm0, %v1477_v21 }
  0x93   : > { %618 = vmatmul.mubr.bf16.gmra.mrb[4].mxu0 %v1479_v22  ;;  %682 = vmatmul.mubr.bf16.gmra.mrb[4].mxu1 %v1480_v23 }
  0x94   : > { %1165 = vmatprep.mubr.msk.bf16.mxu0 %vm524_vm0, %v1481_v24  ;;  %1173 = vmatprep.mubr.msk.bf16.mxu1 %vm524_vm0, %v1483_v25 }
  0x9b   : > { %626 = vmatmul.mubr.bf16.gmra.mrb[8].mxu0 %v1485_v26  ;;  %690 = vmatmul.mubr.bf16.gmra.mrb[8].mxu1 %v1486_v27 }
  0x9c   : > { %1166 = vmatprep.mubr.msk.bf16.mxu0 %vm524_vm0, %v1487_v28  ;;  %1174 = vmatprep.mubr.msk.bf16.mxu1 %vm524_vm0, %v1489_v29 }
  0xa3   : > { %634 = vmatmul.mubr.bf16.gmra.mrb[12].mxu0 %v1491_v30  ;;  %698 = vmatmul.mubr.bf16.gmra.mrb[12].mxu1 %v1492_v31 }
  0xa4   : > { %1167 = vmatprep.mubr.msk.bf16.mxu0 %vm524_vm0, %v1493_v32  ;;  %1175 = vmatprep.mubr.msk.bf16.mxu1 %vm524_vm0, %v1495_v33 }
  0xab   : > { %642 = vmatmul.mubr.bf16.gmra.mrb[16].mxu0 %v1497_v34  ;;  %706 = vmatmul.mubr.bf16.gmra.mrb[16].mxu1 %v1498_v35 }
  0xac   : > { %1168 = vmatprep.mubr.msk.bf16.mxu0 %vm524_vm0, %v1499_v36  ;;  %1176 = vmatprep.mubr.msk.bf16.mxu1 %vm524_vm0, %v1501_v37 }
  0xb3   : > { %650 = vmatmul.mubr.bf16.gmra.mrb[20].mxu0 %v1503_v38  ;;  %714 = vmatmul.mubr.bf16.gmra.mrb[20].mxu1 %v1504_v39 }
  0xb4   : > { %1169 = vmatprep.mubr.msk.bf16.mxu0 %vm524_vm0, %v1505_v40  ;;  %1177 = vmatprep.mubr.msk.bf16.mxu1 %vm524_vm0, %v1507_v41 }
  0xbb   : > { %658 = vmatmul.mubr.bf16.gmra.mrb[24].mxu0 %v1509_v42  ;;  %722 = vmatmul.mubr.bf16.gmra.mrb[24].mxu1 %v1510_v43 }
  0xbc   : > { %1170 = vmatprep.mubr.msk.bf16.mxu0 %vm524_vm0, %v1511_v44  ;;  %1178 = vmatprep.mubr.msk.bf16.mxu1 %vm524_vm0, %v1513_v45 }
  0xc3   : > { %666 = vmatmul.mubr.bf16.gmra.mrb[28].mxu0 %v1515_v46  ;;  %730 = vmatmul.mubr.bf16.gmra.mrb[28].mxu1 %v1516_v47 }
 0x15e   : > { %v1266_v48 = vpop.f32.mrb[0].mxu0  ;;  %v1314_v49 = vpop.f32.mrb[0].mxu1 }
 0x15f   : > { %v1267_v51 = vpop.f32.mrb[1].mxu0  ;;  %v1315_v52 = vpop.f32.mrb[1].mxu1 }
 0x160   : > { %v1268_v53 = vadd.f32 %v1267_v51, %v1266_v48  ;;  %v1316_v54 = vadd.f32 %v1315_v52, %v1314_v49  ;;  %v1269_v55 = vpop.f32.mrb[2].mxu0  ;;  %v1317_v56 = vpop.f32.mrb[2].mxu1 }
 0x161   : > { %v1270_v57 = vpop.f32.mrb[3].mxu0  ;;  %v1318_v58 = vpop.f32.mrb[3].mxu1 }
 0x162   : > { %v612_v59 = vadd.f32 %v1268_v53, %v1940_v50  ;;  %v676_v60 = vadd.f32 %v1316_v54, %v1940_v50  ;;  %v1271_v61 = vadd.f32 %v1270_v57, %v1269_v55  ;;  %v1319_v62 = vadd.f32 %v1318_v58, %v1317_v56 }
 0x164   : > { %vm738_vm2 = vcmp.ge.f32.partialorder %v612_v59, 0.0  ;;  %v770_v63 = vmul.f32 0.25, %v612_v59  ;;  %vm754_vm3 = vcmp.ge.f32.partialorder %v676_v60, 0.0  ;;  %v786_v0 = vmul.f32 0.25, %v676_v60 }
 0x165   : > { %v615_v1 = vadd.f32 %v1271_v61, %v1940_v50  ;;  %v679_v2 = vadd.f32 %v1319_v62, %v1940_v50 }
 0x166   : > { %v802_v3 = vsel %vm738_vm2, %v612_v59, %v770_v63  ;;  %v818_v4 = vsel %vm754_vm3, %v676_v60, %v786_v0  ;;  %v1272_v5 = vpop.f32.mrb[4].mxu0  ;;  %v1320_v6 = vpop.f32.mrb[4].mxu1 }
 0x167   : > { %v1217_v7 = vpack.c.bf16 %v802_v3, %v802_v3  ;;  %v1233_v8 = vpack.c.bf16 %v818_v4, %v818_v4  ;;  %vm739_vm5 = vcmp.ge.f32.partialorder %v615_v1, 0.0  ;;  %v771_v9 = vmul.f32 0.25, %v615_v1  ;;  %v1273_v10 = vpop.f32.mrb[5].mxu0  ;;  %v1321_v11 = vpop.f32.mrb[5].mxu1 }
 0x168   : > { %vm755_vm6 = vcmp.ge.f32.partialorder %v679_v2, 0.0  ;;  %v787_v12 = vmul.f32 0.25, %v679_v2  ;;  %v1274_v13 = vadd.f32 %v1273_v10, %v1272_v5  ;;  %v1322_v14 = vadd.f32 %v1321_v11, %v1320_v6  ;;  %v1275_v15 = vpop.f32.mrb[6].mxu0  ;;  %v1323_v16 = vpop.f32.mrb[6].mxu1 }
 0x169   : > { %963 = vst.msk [vmem:[%s1947_s20] sm:$0xf] %vm962_vm4, %v1217_v7  ;;  %979 = vst.msk [vmem:[%s1947_s20 + $0x40] sm:$0xf] %vm962_vm4, %v1233_v8  ;;  %v803_v17 = vsel %vm739_vm5, %v615_v1, %v771_v9  ;;  %v1276_v18 = vpop.f32.mrb[7].mxu0  ;;  %v1324_v19 = vpop.f32.mrb[7].mxu1 }
 0x16a   : > { %v1218_v20 = vpack.c.bf16 %v803_v17, %v803_v17  ;;  %v819_v21 = vsel %vm755_vm6, %v679_v2, %v787_v12  ;;  %v620_v22 = vadd.f32 %v1274_v13, %v1940_v50  ;;  %v684_v23 = vadd.f32 %v1322_v14, %v1940_v50 }
 0x16b   : > { %v1234_v24 = vpack.c.bf16 %v819_v21, %v819_v21  ;;  %v1277_v25 = vadd.f32 %v1276_v18, %v1275_v15  ;;  %v1325_v26 = vadd.f32 %v1324_v19, %v1323_v16 }
 0x16c   : > { %964 = vst.msk [vmem:[%s1947_s20 + $0x4] sm:$0xf] %vm962_vm4, %v1218_v20  ;;  %vm740_vm7 = vcmp.ge.f32.partialorder %v620_v22, 0.0  ;;  %v772_v27 = vmul.f32 0.25, %v620_v22  ;;  %vm756_vm8 = vcmp.ge.f32.partialorder %v684_v23, 0.0  ;;  %v788_v28 = vmul.f32 0.25, %v684_v23 }
 0x16d   : > { %980 = vst.msk [vmem:[%s1947_s20 + $0x44] sm:$0xf] %vm962_vm4, %v1234_v24  ;;  %v623_v29 = vadd.f32 %v1277_v25, %v1940_v50  ;;  %v687_v30 = vadd.f32 %v1325_v26, %v1940_v50 }
 0x16e   : > { %v804_v31 = vsel %vm740_vm7, %v620_v22, %v772_v27  ;;  %v820_v32 = vsel %vm756_vm8, %v684_v23, %v788_v28  ;;  %v1278_v33 = vpop.f32.mrb[8].mxu0  ;;  %v1326_v34 = vpop.f32.mrb[8].mxu1 }
 0x16f   : > { %v1219_v35 = vpack.c.bf16 %v804_v31, %v804_v31  ;;  %v1235_v36 = vpack.c.bf16 %v820_v32, %v820_v32  ;;  %vm741_vm9 = vcmp.ge.f32.partialorder %v623_v29, 0.0  ;;  %v773_v37 = vmul.f32 0.25, %v623_v29  ;;  %v1279_v38 = vpop.f32.mrb[9].mxu0  ;;  %v1327_v39 = vpop.f32.mrb[9].mxu1 }
 0x170   : > { %vm757_vm10 = vcmp.ge.f32.partialorder %v687_v30, 0.0  ;;  %v789_v40 = vmul.f32 0.25, %v687_v30  ;;  %v1280_v41 = vadd.f32 %v1279_v38, %v1278_v33  ;;  %v1328_v42 = vadd.f32 %v1327_v39, %v1326_v34  ;;  %v1281_v43 = vpop.f32.mrb[10].mxu0  ;;  %v1329_v44 = vpop.f32.mrb[10].mxu1 }
 0x171   : > { %965 = vst.msk [vmem:[%s1947_s20 + $0x8] sm:$0xf] %vm962_vm4, %v1219_v35  ;;  %981 = vst.msk [vmem:[%s1947_s20 + $0x48] sm:$0xf] %vm962_vm4, %v1235_v36  ;;  %v805_v45 = vsel %vm741_vm9, %v623_v29, %v773_v37  ;;  %v1282_v46 = vpop.f32.mrb[11].mxu0  ;;  %v1330_v47 = vpop.f32.mrb[11].mxu1 }
 0x172   : > { %v1220_v48 = vpack.c.bf16 %v805_v45, %v805_v45  ;;  %v821_v49 = vsel %vm757_vm10, %v687_v30, %v789_v40  ;;  %v628_v51 = vadd.f32 %v1280_v41, %v1940_v50  ;;  %v692_v52 = vadd.f32 %v1328_v42, %v1940_v50 }
 0x173   : > { %v1236_v53 = vpack.c.bf16 %v821_v49, %v821_v49  ;;  %v1283_v54 = vadd.f32 %v1282_v46, %v1281_v43  ;;  %v1331_v55 = vadd.f32 %v1330_v47, %v1329_v44 }
 0x174   : > { %966 = vst.msk [vmem:[%s1947_s20 + $0xc] sm:$0xf] %vm962_vm4, %v1220_v48  ;;  %vm742_vm11 = vcmp.ge.f32.partialorder %v628_v51, 0.0  ;;  %v774_v56 = vmul.f32 0.25, %v628_v51  ;;  %vm758_vm12 = vcmp.ge.f32.partialorder %v692_v52, 0.0  ;;  %v790_v57 = vmul.f32 0.25, %v692_v52 }
 0x175   : > { %982 = vst.msk [vmem:[%s1947_s20 + $0x4c] sm:$0xf] %vm962_vm4, %v1236_v53  ;;  %v631_v58 = vadd.f32 %v1283_v54, %v1940_v50  ;;  %v695_v59 = vadd.f32 %v1331_v55, %v1940_v50 }
 0x176   : > { %v806_v60 = vsel %vm742_vm11, %v628_v51, %v774_v56  ;;  %v822_v61 = vsel %vm758_vm12, %v692_v52, %v790_v57  ;;  %v1284_v62 = vpop.f32.mrb[12].mxu0  ;;  %v1332_v63 = vpop.f32.mrb[12].mxu1 }
 0x177   : > { %v1221_v0 = vpack.c.bf16 %v806_v60, %v806_v60  ;;  %v1237_v1 = vpack.c.bf16 %v822_v61, %v822_v61  ;;  %vm743_vm13 = vcmp.ge.f32.partialorder %v631_v58, 0.0  ;;  %v775_v2 = vmul.f32 0.25, %v631_v58  ;;  %v1285_v3 = vpop.f32.mrb[13].mxu0  ;;  %v1333_v4 = vpop.f32.mrb[13].mxu1 }
 0x178   : > { %vm759_vm14 = vcmp.ge.f32.partialorder %v695_v59, 0.0  ;;  %v791_v5 = vmul.f32 0.25, %v695_v59  ;;  %v1286_v6 = vadd.f32 %v1285_v3, %v1284_v62  ;;  %v1334_v7 = vadd.f32 %v1333_v4, %v1332_v63  ;;  %v1287_v8 = vpop.f32.mrb[14].mxu0  ;;  %v1335_v9 = vpop.f32.mrb[14].mxu1 }
 0x179   : > { %967 = vst.msk [vmem:[%s1947_s20 + $0x10] sm:$0xf] %vm962_vm4, %v1221_v0  ;;  %983 = vst.msk [vmem:[%s1947_s20 + $0x50] sm:$0xf] %vm962_vm4, %v1237_v1  ;;  %v807_v10 = vsel %vm743_vm13, %v631_v58, %v775_v2  ;;  %v1288_v11 = vpop.f32.mrb[15].mxu0  ;;  %v1336_v12 = vpop.f32.mrb[15].mxu1 }
 0x17a   : > { %v1222_v13 = vpack.c.bf16 %v807_v10, %v807_v10  ;;  %v823_v14 = vsel %vm759_vm14, %v695_v59, %v791_v5  ;;  %v636_v15 = vadd.f32 %v1286_v6, %v1940_v50  ;;  %v700_v16 = vadd.f32 %v1334_v7, %v1940_v50 }
 0x17b   : > { %v1238_v17 = vpack.c.bf16 %v823_v14, %v823_v14  ;;  %v1289_v18 = vadd.f32 %v1288_v11, %v1287_v8  ;;  %v1337_v19 = vadd.f32 %v1336_v12, %v1335_v9 }
 0x17c   : > { %968 = vst.msk [vmem:[%s1947_s20 + $0x14] sm:$0xf] %vm962_vm4, %v1222_v13  ;;  %vm744_vm15 = vcmp.ge.f32.partialorder %v636_v15, 0.0  ;;  %v776_v20 = vmul.f32 0.25, %v636_v15  ;;  %vm760_vm0 = vcmp.ge.f32.partialorder %v700_v16, 0.0  ;;  %v792_v21 = vmul.f32 0.25, %v700_v16 }
 0x17d   : > { %984 = vst.msk [vmem:[%s1947_s20 + $0x54] sm:$0xf] %vm962_vm4, %v1238_v17  ;;  %v639_v22 = vadd.f32 %v1289_v18, %v1940_v50  ;;  %v703_v23 = vadd.f32 %v1337_v19, %v1940_v50 }
 0x17e   : > { %v808_v24 = vsel %vm744_vm15, %v636_v15, %v776_v20  ;;  %v824_v25 = vsel %vm760_vm0, %v700_v16, %v792_v21  ;;  %v1290_v26 = vpop.f32.mrb[16].mxu0  ;;  %v1338_v27 = vpop.f32.mrb[16].mxu1 }
 0x17f   : > { %v1223_v28 = vpack.c.bf16 %v808_v24, %v808_v24  ;;  %v1239_v29 = vpack.c.bf16 %v824_v25, %v824_v25  ;;  %vm745_vm1 = vcmp.ge.f32.partialorder %v639_v22, 0.0  ;;  %v777_v30 = vmul.f32 0.25, %v639_v22  ;;  %v1291_v31 = vpop.f32.mrb[17].mxu0  ;;  %v1339_v32 = vpop.f32.mrb[17].mxu1 }
 0x180   : > { %vm761_vm2 = vcmp.ge.f32.partialorder %v703_v23, 0.0  ;;  %v793_v33 = vmul.f32 0.25, %v703_v23  ;;  %v1292_v34 = vadd.f32 %v1291_v31, %v1290_v26  ;;  %v1340_v35 = vadd.f32 %v1339_v32, %v1338_v27  ;;  %v1293_v36 = vpop.f32.mrb[18].mxu0  ;;  %v1341_v37 = vpop.f32.mrb[18].mxu1 }
 0x181   : > { %969 = vst.msk [vmem:[%s1947_s20 + $0x18] sm:$0xf] %vm962_vm4, %v1223_v28  ;;  %985 = vst.msk [vmem:[%s1947_s20 + $0x58] sm:$0xf] %vm962_vm4, %v1239_v29  ;;  %v809_v38 = vsel %vm745_vm1, %v639_v22, %v777_v30  ;;  %v1294_v39 = vpop.f32.mrb[19].mxu0  ;;  %v1342_v40 = vpop.f32.mrb[19].mxu1 }
 0x182   : > { %v1224_v41 = vpack.c.bf16 %v809_v38, %v809_v38  ;;  %v825_v42 = vsel %vm761_vm2, %v703_v23, %v793_v33  ;;  %v644_v43 = vadd.f32 %v1292_v34, %v1940_v50  ;;  %v708_v44 = vadd.f32 %v1340_v35, %v1940_v50 }
 0x183   : > { %v1240_v45 = vpack.c.bf16 %v825_v42, %v825_v42  ;;  %v1295_v46 = vadd.f32 %v1294_v39, %v1293_v36  ;;  %v1343_v47 = vadd.f32 %v1342_v40, %v1341_v37 }
 0x184   : > { %970 = vst.msk [vmem:[%s1947_s20 + $0x1c] sm:$0xf] %vm962_vm4, %v1224_v41  ;;  %vm746_vm3 = vcmp.ge.f32.partialorder %v644_v43, 0.0  ;;  %v778_v48 = vmul.f32 0.25, %v644_v43  ;;  %vm762_vm5 = vcmp.ge.f32.partialorder %v708_v44, 0.0  ;;  %v794_v49 = vmul.f32 0.25, %v708_v44 }
 0x185   : > { %986 = vst.msk [vmem:[%s1947_s20 + $0x5c] sm:$0xf] %vm962_vm4, %v1240_v45  ;;  %v647_v51 = vadd.f32 %v1295_v46, %v1940_v50  ;;  %v711_v52 = vadd.f32 %v1343_v47, %v1940_v50 }
 0x186   : > { %v810_v53 = vsel %vm746_vm3, %v644_v43, %v778_v48  ;;  %v826_v54 = vsel %vm762_vm5, %v708_v44, %v794_v49  ;;  %v1296_v55 = vpop.f32.mrb[20].mxu0  ;;  %v1344_v56 = vpop.f32.mrb[20].mxu1 }
 0x187   : > { %v1225_v57 = vpack.c.bf16 %v810_v53, %v810_v53  ;;  %v1241_v58 = vpack.c.bf16 %v826_v54, %v826_v54  ;;  %vm747_vm6 = vcmp.ge.f32.partialorder %v647_v51, 0.0  ;;  %v779_v59 = vmul.f32 0.25, %v647_v51  ;;  %v1297_v60 = vpop.f32.mrb[21].mxu0  ;;  %v1345_v61 = vpop.f32.mrb[21].mxu1 }
 0x188   : > { %vm763_vm7 = vcmp.ge.f32.partialorder %v711_v52, 0.0  ;;  %v795_v62 = vmul.f32 0.25, %v711_v52  ;;  %v1298_v63 = vadd.f32 %v1297_v60, %v1296_v55  ;;  %v1346_v0 = vadd.f32 %v1345_v61, %v1344_v56  ;;  %v1299_v1 = vpop.f32.mrb[22].mxu0  ;;  %v1347_v2 = vpop.f32.mrb[22].mxu1 }
 0x189   : > { %971 = vst.msk [vmem:[%s1947_s20 + $0x20] sm:$0xf] %vm962_vm4, %v1225_v57  ;;  %987 = vst.msk [vmem:[%s1947_s20 + $0x60] sm:$0xf] %vm962_vm4, %v1241_v58  ;;  %v811_v3 = vsel %vm747_vm6, %v647_v51, %v779_v59  ;;  %v1300_v4 = vpop.f32.mrb[23].mxu0  ;;  %v1348_v5 = vpop.f32.mrb[23].mxu1 }
 0x18a   : > { %v1226_v6 = vpack.c.bf16 %v811_v3, %v811_v3  ;;  %v827_v7 = vsel %vm763_vm7, %v711_v52, %v795_v62  ;;  %v652_v8 = vadd.f32 %v1298_v63, %v1940_v50  ;;  %v716_v9 = vadd.f32 %v1346_v0, %v1940_v50 }
 0x18b   : > { %v1242_v10 = vpack.c.bf16 %v827_v7, %v827_v7  ;;  %v1301_v11 = vadd.f32 %v1300_v4, %v1299_v1  ;;  %v1349_v12 = vadd.f32 %v1348_v5, %v1347_v2 }
 0x18c   : > { %972 = vst.msk [vmem:[%s1947_s20 + $0x24] sm:$0xf] %vm962_vm4, %v1226_v6  ;;  %vm748_vm8 = vcmp.ge.f32.partialorder %v652_v8, 0.0  ;;  %v780_v13 = vmul.f32 0.25, %v652_v8  ;;  %vm764_vm9 = vcmp.ge.f32.partialorder %v716_v9, 0.0  ;;  %v796_v14 = vmul.f32 0.25, %v716_v9 }
 0x18d   : > { %988 = vst.msk [vmem:[%s1947_s20 + $0x64] sm:$0xf] %vm962_vm4, %v1242_v10  ;;  %v655_v15 = vadd.f32 %v1301_v11, %v1940_v50  ;;  %v719_v16 = vadd.f32 %v1349_v12, %v1940_v50 }
 0x18e   : > { %v812_v17 = vsel %vm748_vm8, %v652_v8, %v780_v13  ;;  %v828_v18 = vsel %vm764_vm9, %v716_v9, %v796_v14  ;;  %v1302_v19 = vpop.f32.mrb[24].mxu0  ;;  %v1350_v20 = vpop.f32.mrb[24].mxu1 }
 0x18f   : > { %v1227_v21 = vpack.c.bf16 %v812_v17, %v812_v17  ;;  %v1243_v22 = vpack.c.bf16 %v828_v18, %v828_v18  ;;  %vm749_vm10 = vcmp.ge.f32.partialorder %v655_v15, 0.0  ;;  %v781_v23 = vmul.f32 0.25, %v655_v15  ;;  %v1303_v24 = vpop.f32.mrb[25].mxu0  ;;  %v1351_v25 = vpop.f32.mrb[25].mxu1 }
 0x190   : > { %vm765_vm11 = vcmp.ge.f32.partialorder %v719_v16, 0.0  ;;  %v797_v26 = vmul.f32 0.25, %v719_v16  ;;  %v1304_v27 = vadd.f32 %v1303_v24, %v1302_v19  ;;  %v1352_v28 = vadd.f32 %v1351_v25, %v1350_v20  ;;  %v1305_v29 = vpop.f32.mrb[26].mxu0  ;;  %v1353_v30 = vpop.f32.mrb[26].mxu1 }
 0x191   : > { %973 = vst.msk [vmem:[%s1947_s20 + $0x28] sm:$0xf] %vm962_vm4, %v1227_v21  ;;  %989 = vst.msk [vmem:[%s1947_s20 + $0x68] sm:$0xf] %vm962_vm4, %v1243_v22  ;;  %v813_v31 = vsel %vm749_vm10, %v655_v15, %v781_v23  ;;  %v1306_v32 = vpop.f32.mrb[27].mxu0  ;;  %v1354_v33 = vpop.f32.mrb[27].mxu1 }
 0x192   : > { %v1228_v34 = vpack.c.bf16 %v813_v31, %v813_v31  ;;  %v829_v35 = vsel %vm765_vm11, %v719_v16, %v797_v26  ;;  %v660_v36 = vadd.f32 %v1304_v27, %v1940_v50  ;;  %v724_v37 = vadd.f32 %v1352_v28, %v1940_v50 }
 0x193   : > { %v1244_v38 = vpack.c.bf16 %v829_v35, %v829_v35  ;;  %v1307_v39 = vadd.f32 %v1306_v32, %v1305_v29  ;;  %v1355_v40 = vadd.f32 %v1354_v33, %v1353_v30 }
 0x194   : > { %974 = vst.msk [vmem:[%s1947_s20 + $0x2c] sm:$0xf] %vm962_vm4, %v1228_v34  ;;  %vm750_vm12 = vcmp.ge.f32.partialorder %v660_v36, 0.0  ;;  %v782_v41 = vmul.f32 0.25, %v660_v36  ;;  %vm766_vm13 = vcmp.ge.f32.partialorder %v724_v37, 0.0  ;;  %v798_v42 = vmul.f32 0.25, %v724_v37 }
 0x195   : > { %990 = vst.msk [vmem:[%s1947_s20 + $0x6c] sm:$0xf] %vm962_vm4, %v1244_v38  ;;  %v663_v43 = vadd.f32 %v1307_v39, %v1940_v50  ;;  %v727_v44 = vadd.f32 %v1355_v40, %v1940_v50 }
 0x196   : > { %v814_v45 = vsel %vm750_vm12, %v660_v36, %v782_v41  ;;  %v830_v46 = vsel %vm766_vm13, %v724_v37, %v798_v42  ;;  %v1308_v47 = vpop.f32.mrb[28].mxu0  ;;  %v1356_v48 = vpop.f32.mrb[28].mxu1 }
 0x197   : > { %v1229_v49 = vpack.c.bf16 %v814_v45, %v814_v45  ;;  %v1245_v51 = vpack.c.bf16 %v830_v46, %v830_v46  ;;  %vm751_vm14 = vcmp.ge.f32.partialorder %v663_v43, 0.0  ;;  %v783_v52 = vmul.f32 0.25, %v663_v43  ;;  %v1309_v53 = vpop.f32.mrb[29].mxu0  ;;  %v1357_v54 = vpop.f32.mrb[29].mxu1 }
 0x198   : > { %vm767_vm15 = vcmp.ge.f32.partialorder %v727_v44, 0.0  ;;  %v799_v55 = vmul.f32 0.25, %v727_v44  ;;  %v1310_v56 = vadd.f32 %v1309_v53, %v1308_v47  ;;  %v1358_v57 = vadd.f32 %v1357_v54, %v1356_v48  ;;  %v1311_v58 = vpop.f32.mrb[30].mxu0  ;;  %v1359_v59 = vpop.f32.mrb[30].mxu1 }
 0x199   : > { %975 = vst.msk [vmem:[%s1947_s20 + $0x30] sm:$0xf] %vm962_vm4, %v1229_v49  ;;  %991 = vst.msk [vmem:[%s1947_s20 + $0x70] sm:$0xf] %vm962_vm4, %v1245_v51  ;;  %v815_v60 = vsel %vm751_vm14, %v663_v43, %v783_v52  ;;  %v1312_v61 = vpop.f32.mrb[31].mxu0  ;;  %v1360_v62 = vpop.f32.mrb[31].mxu1 }
 0x19a   : > { %v1230_v63 = vpack.c.bf16 %v815_v60, %v815_v60  ;;  %v831_v0 = vsel %vm767_vm15, %v727_v44, %v799_v55  ;;  %v668_v1 = vadd.f32 %v1310_v56, %v1940_v50  ;;  %v732_v2 = vadd.f32 %v1358_v57, %v1940_v50 }
 0x19b   : > { %v1246_v3 = vpack.c.bf16 %v831_v0, %v831_v0  ;;  %v1313_v4 = vadd.f32 %v1312_v61, %v1311_v58  ;;  %v1361_v5 = vadd.f32 %v1360_v62, %v1359_v59 }
 0x19c   : > { %976 = vst.msk [vmem:[%s1947_s20 + $0x34] sm:$0xf] %vm962_vm4, %v1230_v63  ;;  %vm752_vm0 = vcmp.ge.f32.partialorder %v668_v1, 0.0  ;;  %v784_v6 = vmul.f32 0.25, %v668_v1  ;;  %vm768_vm1 = vcmp.ge.f32.partialorder %v732_v2, 0.0  ;;  %v800_v7 = vmul.f32 0.25, %v732_v2 }
 0x19d   : > { %992 = vst.msk [vmem:[%s1947_s20 + $0x74] sm:$0xf] %vm962_vm4, %v1246_v3  ;;  %v671_v8 = vadd.f32 %v1313_v4, %v1940_v50  ;;  %v735_v9 = vadd.f32 %v1361_v5, %v1940_v50 }
 0x19e   : > { %v816_v10 = vsel %vm752_vm0, %v668_v1, %v784_v6  ;;  %v832_v11 = vsel %vm768_vm1, %v732_v2, %v800_v7 }
 0x19f   : > { %v1231_v12 = vpack.c.bf16 %v816_v10, %v816_v10  ;;  %v1247_v13 = vpack.c.bf16 %v832_v11, %v832_v11  ;;  %vm753_vm2 = vcmp.ge.f32.partialorder %v671_v8, 0.0  ;;  %v785_v14 = vmul.f32 0.25, %v671_v8 }
 0x1a0   : > { %vm769_vm3 = vcmp.ge.f32.partialorder %v735_v9, 0.0  ;;  %v801_v15 = vmul.f32 0.25, %v735_v9 }
 0x1a1   : > { %977 = vst.msk [vmem:[%s1947_s20 + $0x38] sm:$0xf] %vm962_vm4, %v1231_v12  ;;  %993 = vst.msk [vmem:[%s1947_s20 + $0x78] sm:$0xf] %vm962_vm4, %v1247_v13  ;;  %v817_v16 = vsel %vm753_vm2, %v671_v8, %v785_v14 }
 0x1a2   : > { %v1232_v50 = vpack.c.bf16 %v817_v16, %v817_v16  ;;  %v833_v17 = vsel %vm769_vm3, %v735_v9, %v801_v15 }
 0x1a3   : > { %v1248_v18 = vpack.c.bf16 %v833_v17, %v833_v17 }
 0x1a4   : > { %978 = vst.msk [vmem:[%s1947_s20 + $0x3c] sm:$0xf] %vm962_vm4, %v1232_v50 }
 0x1a5   : > { %994 = vst.msk [vmem:[%s1947_s20 + $0x7c] sm:$0xf] %vm962_vm4, %v1248_v18 }
 0x1a6   : > { %1616 = shalt.err (!%p1613_p2)
}
 0x1a7   : > { %s1617_s11 = scalar_lea.hbm %s2042_s23, 2048  ;;  %s1621_s29 = scalar_lea.hbm %s2095_s3, 4096 }
 0x1a8   : > { %p1618_p13 = scmp.ne.s32.totalorder %s2042_s23, %s1617_s11  ;;  %p1622_p4 = scmp.lt.u32.totalorder %s2042_s23, %s2095_s3 }
 0x1a9   : > { %p1623_p5 = scmp.lt.u32.totalorder %s1621_s29, %s1617_s11  ;;  %p1625_p11 = scmp.lt.u32.totalorder %s1617_s11, %s2042_s23 }
 0x1aa   : > { %p1619_p6 = pnand %p1618_p13, %p2109_p0 }
 0x1ab   : > { %p1624_p8 = por %p1623_p5, %p1622_p4 }
 0x1ac   : > { %p1620_p10 = pneg %p1619_p6 }
 0x1ad   : > { %p1626_p1 = por %p1625_p11, %p1624_p8 }
 0x1af   : > { %p1627_p3 = pnand %p1626_p1, %p1620_p10 }
 0x1b1   : > { %1630 = shalt.err (!%p1627_p3)
}
 0x1b2   : > { %s1683_s18 = smov 64   ;;  %s1684_s20 = smov 4  }
 0x1b3   : > { %1390 = dma.vmem_to_hbm [thread:$0]  (%p2109_p0), %s2044_s26, 2048, %s2042_s23, %s996_s16, %s1683_s18, %s1683_s18, %s1684_s20  }
 0x1b4 PF: > { %s1024_s21 = sand.u32 1, %s1661_s12   ;;  %p2110_p7 = scmp.ne.s32.totalorder %s2100_s19, 0 }
 0x1b5   : > { %p2111_p9 = scmp.ge.s32.totalorder %s1673_s15, 2  ;;  %s1025_s27 = scalar_lea.sflag [#allocation4], %s1024_s21 }
 0x1b7   : > { %p1404_p12 = pnand %p2111_p9, %p2110_p7 }
 0x1b9   : > { %1656 = dma.done.wait (!%p1404_p12), %s1025_s27, 2048  }
 0x1ba   : > { %1658 = vsyncadd (!%p1404_p12), %s1025_s27, 4294965248  ;;  %p17_p2 = scmp.ge.s32.totalorder %s1816_s5, 4   ;;  %s2112_s12 = smov %s1665_s13 }
 0x1bb   : > { %s2113_s13 = smov %s1669_s14  ;;  %s2114_s14 = smov %s1832_s8 }
 0x1bc   : > { %s2115_s15 = smov %s1816_s5  ;;  %19 = sbr.rel (!%p17_p2) target bundleno = 6 (0x6), region = 85 }
 0x1c3   :  { %1030 = vsyncpa [#allocation3], 1 }
 0x1c4   :  { %1032 = vsyncpa [#allocation3 + $0x1], 1 }
 0x1c5   :  { %1033 = vsyncpa [#allocation6], 1 }
 0x1c6   :  { %1034 = vsyncpa [#allocation4], 1 }
 0x1c7   :  { %1036 = vsyncpa [#allocation4 + $0x1], 1 }

</bundles_post_ra>
